<compile_context>
chip_gen: v7x
topology: tpu7x:2x2x1
jax: 0.10.0
libtpu: 0.0.40
codegen_flags: <defaults>
</compile_context>

<pallas_src>
import jax
import jax.numpy as jnp
from jax.experimental import pallas as pl
from jax.experimental.pallas import tpu as pltpu


# --------------------------------------------------------------------------
# Tile-size selection
# --------------------------------------------------------------------------
_TARGET_INPUT_TILE_BYTES = 4 << 20          # ~4 MiB per input tile (2-8 MiB window)


def _round_up(x: int, m: int) -> int:
    return ((x + m - 1) // m) * m


def _sublane_multiple(dtype) -> int:
    """Row multiple for sublane packing: 8 for 4B dtypes, 16 for bf16, 32 for i8/fp8."""
    itemsize = jnp.dtype(dtype).itemsize
    return max(8, 32 // max(itemsize, 1))


def _vmem_budget_bytes():
    """(working-set budget, vmem_limit_bytes) per TPU generation.

    v5e/v6e (128 MiB physical) -> 28 MiB budget; v7x (64 MiB) -> 24 MiB.
    Conservative fallback (fits every generation's scoped default) if the
    hardware query is unavailable.
    """
    try:
        physical = int(pltpu.get_tpu_info().vmem_capacity_bytes)
    except Exception:
        return 12 << 20, None
    budget = min((physical * 3) // 8, 28 << 20)
    vmem_limit = min(physical, budget + (8 << 20))   # only ever raises the default
    return budget, vmem_limit


def _choose_batch_tile(B: int, D: int, itemsize: int, sublane: int,
                       budget_bytes: int) -> int:
    d = max(D, 1)
    # Double-buffered VMEM cost per batch row:
    #   2 input tiles * 2 pipeline buffers * D * itemsize
    # + 1 lane-padded (tb, 1) f32 output block * 2 buffers * 128 lanes * 4 B
    per_row = 4 * d * itemsize + 2 * 128 * 4
    tb_vmem = max(sublane, (budget_bytes // per_row) // sublane * sublane)
    # Byte-based target: big enough to amortize the ~0.35 us per-step overhead.
    tb_target = max(sublane, _round_up(pl.cdiv(_TARGET_INPUT_TILE_BYTES,
                                               d * itemsize), sublane))
    tb = min(tb_target, tb_vmem, _round_up(B, sublane))
    return max(tb, sublane)


# --------------------------------------------------------------------------
# Pallas kernel
# --------------------------------------------------------------------------
def _energy_kernel(emb_i_ref, emb_j_ref, e_ref):
    """e[b] = sum_d max(0, emb_j[b,d] - emb_i[b,d])**2   (one batch tile)."""
    diff = emb_j_ref[...].astype(jnp.float32) - emb_i_ref[...].astype(jnp.float32)
    viol = jnp.maximum(diff, 0.0)
    e_ref[...] = jnp.sum(viol * viol, axis=1, keepdims=True)      # (TB, 1)


def _order_violation_energy(node_emb_i, node_emb_j, batch_tile=None):
    """Batch-tiled, auto-pipelined energy computation. Returns (B,) float32."""
    B, D = node_emb_i.shape
    itemsize = jnp.dtype(node_emb_i.dtype).itemsize
    sublane = _sublane_multiple(node_emb_i.dtype)
    budget, vmem_limit = _vmem_budget_bytes()

    if batch_tile is not None:
        tb = min(_round_up(int(batch_tile), sublane), _round_up(B, sublane))
    else:
        tb = _choose_batch_tile(B, D, itemsize, sublane, budget)

    grid = (pl.cdiv(B, tb),)
    cost = pl.CostEstimate(flops=4 * B * D, transcendentals=0,
                           bytes_accessed=2 * B * D * itemsize + B * 4)
    cp_kwargs = dict(dimension_semantics=("parallel",))
    if vmem_limit is not None:
        cp_kwargs["vmem_limit_bytes"] = int(vmem_limit)

    # Note: the (tb,1) e output is a masked/narrow store; output bytes are
    # 1/(2D) of the input DMA, so a lane-dense e layout is not worth it here.
    e = pl.pallas_call(
        _energy_kernel,
        out_shape=jax.ShapeDtypeStruct((B, 1), jnp.float32),
        grid=grid,
        in_specs=[
            pl.BlockSpec((tb, D), lambda i: (i, 0)),
            pl.BlockSpec((tb, D), lambda i: (i, 0)),
        ],
        out_specs=pl.BlockSpec((tb, 1), lambda i: (i, 0)),
        compiler_params=pltpu.CompilerParams(**cp_kwargs),
        cost_estimate=cost,
    )(node_emb_i, node_emb_j)
    return e[:, 0]                     # (B,), matches torch.sum(..., dim=1)


# --------------------------------------------------------------------------
# Module wrapper
# --------------------------------------------------------------------------
class OrderEmbedder:
    """JAX/Pallas port of sgmatch OrderEmbedder (no learnable parameters)."""

    def __init__(self, margin: float, use_intersection: bool = False,
                 batch_tile: int | None = None):
        self.margin = float(margin)
        self.use_intersection = use_intersection
        if batch_tile is not None and (batch_tile <= 0 or batch_tile % 8 != 0):
            raise ValueError("batch_tile must be a positive multiple of 8")
        self.batch_tile = batch_tile

    # forward() in the PyTorch module simply returns the pair untouched.
    def forward(self, node_emb_i, node_emb_j):
        return (node_emb_i, node_emb_j)

    __call__ = forward

    # ---------------------------------------------------------------- predict
    def predict(self, node_emb_i, node_emb_j):
        return _order_violation_energy(node_emb_i, node_emb_j, self.batch_tile)

    # -------------------------------------------------------------- criterion
    def _relation_loss(self, e, labels):
        # Tiny JAX epilogue over (B,) scalars: margin hinge for negatives,
        # tree-sum reduction (better precision than sequential accumulation).
        e_neg = jnp.maximum(jnp.float32(0.0), jnp.float32(self.margin) - e)
        per_row = jnp.where(labels == 0, e_neg, e)
        return jnp.sum(per_row)

    def criterion(self, node_emb_i, node_emb_j, labels, intersect_embs=None):
        # intersect_embs is unused in the reference implementation.
        e = _order_violation_energy(node_emb_i, node_emb_j, self.batch_tile)
        return self._relation_loss(e, labels)

    def predict_and_criterion(self, node_emb_i, node_emb_j, labels):
        """Energies + loss from a single HBM read of the embeddings."""
        e = _order_violation_energy(node_emb_i, node_emb_j, self.batch_tile)
        return e, self._relation_loss(e, labels)


# --------------------------------------------------------------------------
# Demo / self-test
# --------------------------------------------------------------------------
def _reference(model, emb_i, emb_j, labels):
    e = jnp.sum(jnp.maximum(0.0, emb_j - emb_i) ** 2, axis=1)
    e_neg = jnp.maximum(0.0, model.margin - e)
    loss = jnp.sum(jnp.where(labels == 0, e_neg, e))
    return e, loss


if __name__ == "__main__":
    key = jax.random.PRNGKey(0)

    ok = True
    # Case 1: small, evenly divisible batch (auto tile -> single grid step).
    # Case 2: B not a multiple of the (forced small) tile -> multi-step grid,
    #         partial final tile exercised.
    for (B, D, forced_tb) in [(8, 32, None), (20, 64, 8)]:
        key, k1, k2, k3 = jax.random.split(key, 4)
        node_emb_i = jax.random.normal(k1, (B, D), dtype=jnp.float32)
        node_emb_j = jax.random.normal(k2, (B, D), dtype=jnp.float32)
        labels = (jax.random.uniform(k3, (B,)) > 0.5).astype(jnp.int32)

        model = OrderEmbedder(margin=0.1, batch_tile=forced_tb)

        # forward: identity pass-through of the pair
        out_i, out_j = model(node_emb_i, node_emb_j)

        # predict: per-pair order-violation energy (Pallas kernel)
        e = jax.block_until_ready(model.predict(out_i, out_j))

        # criterion: margin loss over the batch (Pallas kernel + JAX epilogue)
        loss = jax.block_until_ready(model.criterion(out_i, out_j, labels))

        # fused path: energies + loss from one kernel call
        e_f, loss_f = model.predict_and_criterion(out_i, out_j, labels)
        e_f = jax.block_until_ready(e_f)
        loss_f = jax.block_until_ready(loss_f)

        e_ref, loss_ref = _reference(model, node_emb_i, node_emb_j, labels)

        ok &= bool(jnp.allclose(e, e_ref, atol=1e-5))
        ok &= bool(jnp.allclose(loss, loss_ref, atol=1e-5))
        ok &= bool(jnp.allclose(e_f, e_ref, atol=1e-5))
        ok &= bool(jnp.allclose(loss_f, loss_ref, atol=1e-5))

    assert ok, "Pallas OrderEmbedder kernels mismatch reference"
    print("KERNEL_OK")
</pallas_src>

<mosaic_0001>
module attributes {stable_mosaic.version = 11 : i64} {
  func.func @_energy_kernel(%arg0: i32, %arg1: memref<8x32xf32, #tpu.memory_space<vmem>>, %arg2: memref<8x32xf32, #tpu.memory_space<vmem>>, %arg3: memref<8x1xf32, #tpu.memory_space<vmem>>) attributes {dimension_semantics = [#tpu.dimension_semantics<parallel>], iteration_bounds = array<i64: 1>, scalar_prefetch = 0 : i64, scratch_operands = 0 : i64, tpu.core_type = #tpu.core_type<tc>, window_params = [{transform_indices = @transform_0, window_bounds = array<i64: 8, 32>}, {transform_indices = @transform_1, window_bounds = array<i64: 8, 32>}, {transform_indices = @transform_2, window_bounds = array<i64: 8, 1>}]} {
    %c0 = arith.constant 0 : index
    %c0_0 = arith.constant 0 : index
    %0 = vector.load %arg2[%c0, %c0_0] : memref<8x32xf32, #tpu.memory_space<vmem>>, vector<8x32xf32>
    %c0_1 = arith.constant 0 : index
    %c0_2 = arith.constant 0 : index
    %1 = vector.load %arg1[%c0_1, %c0_2] : memref<8x32xf32, #tpu.memory_space<vmem>>, vector<8x32xf32>
    %2 = arith.subf %0, %1 : vector<8x32xf32>
    %cst = arith.constant 0.000000e+00 : f32
    %3 = vector.broadcast %cst : f32 to vector<8x32xf32>
    %4 = arith.maximumf %2, %3 : vector<8x32xf32>
    %5 = arith.mulf %4, %4 : vector<8x32xf32>
    %cst_3 = arith.constant dense<0.000000e+00> : vector<8xf32>
    %6 = vector.multi_reduction <add>, %5, %cst_3 [1] : vector<8x32xf32> to vector<8xf32>
    %7 = vector.shape_cast %6 : vector<8xf32> to vector<8x1xf32>
    %c0_4 = arith.constant 0 : index
    %c0_5 = arith.constant 0 : index
    %8 = vector.load %arg3[%c0_4, %c0_5] : memref<8x1xf32, #tpu.memory_space<vmem>>, vector<8x1xf32>
    tpu.vector_store %arg3[%c0_4, %c0_5], %7 {strides = array<i32>} : memref<8x1xf32, #tpu.memory_space<vmem>>, vector<8x1xf32>,
    return
  }
  func.func @transform_0(%arg0: i32) -> (i32, i32) {
    %c0_i32 = arith.constant 0 : i32
    %c0_i32_0 = arith.constant 0 : i32
    return %arg0, %c0_i32 : i32, i32
  }
  func.func @transform_1(%arg0: i32) -> (i32, i32) {
    %c0_i32 = arith.constant 0 : i32
    %c0_i32_0 = arith.constant 0 : i32
    return %arg0, %c0_i32 : i32, i32
  }
  func.func @transform_2(%arg0: i32) -> (i32, i32) {
    %c0_i32 = arith.constant 0 : i32
    %c0_i32_0 = arith.constant 0 : i32
    return %arg0, %c0_i32 : i32, i32
  }
}

</mosaic_0001>

<bundles_post_ra>
// kernel: tpu_custom_call.1
= control target key start
LH: loop header
LB: loop body
LE: loop exit
PB: predicated region body
PF: predicated region fallthrough
CT: control target
= control target key end

     0   :  { %7 = vsyncpa [#allocation3], 0  ;;  %s146_s0 = inlined_call_operand.hbm [shape: f32[8,32], index: 0, kind: input, shape index: {}]   ;;  %s147_s1 = inlined_call_operand.hbm [shape: f32[8,32], index: 1, kind: input, shape index: {}]   ;;  %s148_s2 = inlined_call_operand.vmem [shape: f32[8,1], index: 2, kind: output, shape index: {}]  }
   0x1   :  { %8 = vsyncpa [#allocation5], 0  ;;  %s102_s9 = smov [#allocation2]   ;;  %s103_s11 = smov [#allocation4]  }
   0x2   :  { %s15_s10 = sshll.u32 %s102_s9, 4  ;;  %s25_s12 = sshll.u32 %s103_s11, 4  ;;  %s16_s10 = int_to_ptr.vmem [resolvable:$true] %s15_s10  ;;  %s26_s12 = int_to_ptr.vmem [resolvable:$true] %s25_s12 }
   0x3   :  { %s54_s15 = scalar_lea.hbm %s146_s0, 128 }
   0x4   :  { %p55_p0 = scmp.ne.s32.totalorder %s146_s0, %s54_s15  ;;  %p58_p1 = scmp.lt.u32.totalorder %s54_s15, %s146_s0 }
   0x6   :  { %p60_p2 = pnand %p58_p1, %p55_p0 }
   0x8   :  { %63 = shalt.err (!%p60_p2)
}
   0x9   :  { %s64_s20 = scalar_lea.vmem %s16_s10, 128  ;;  %p69_p4 = scmp.lt.s32.totalorder %s16_s10, %s16_s10 }
   0xa   :  { %p65_p3 = scmp.ne.s32.totalorder %s16_s10, %s64_s20  ;;  %p70_p5 = scmp.lt.s32.totalorder %s64_s20, %s64_s20 }
   0xc   :  { %p71_p6 = por %p70_p5, %p69_p4 }
   0xe   :  { %p72_p7 = pnand %p71_p6, %p65_p3 }
  0x10   :  { %75 = shalt.err (!%p72_p7)
}
  0x11   :  { %18 = dma.hbm_to_vmem [thread:$0]  %s146_s0, 128, %s16_s10, [#allocation3]  }
  0x12   :  { %s76_s25 = scalar_lea.hbm %s147_s1, 128 }
  0x13   :  { %p77_p8 = scmp.ne.s32.totalorder %s147_s1, %s76_s25  ;;  %p80_p9 = scmp.lt.u32.totalorder %s76_s25, %s147_s1 }
  0x15   :  { %p82_p10 = pnand %p80_p9, %p77_p8 }
  0x17   :  { %85 = shalt.err (!%p82_p10)
}
  0x18   :  { %s86_s30 = scalar_lea.vmem %s26_s12, 128  ;;  %p91_p12 = scmp.lt.s32.totalorder %s26_s12, %s26_s12 }
  0x19   :  { %p87_p11 = scmp.ne.s32.totalorder %s26_s12, %s86_s30  ;;  %p92_p13 = scmp.lt.s32.totalorder %s86_s30, %s86_s30 }
  0x1b   :  { %p93_p0 = por %p92_p13, %p91_p12 }
  0x1d   :  { %p94_p1 = pnand %p93_p0, %p87_p11 }
  0x1f   :  { %97 = shalt.err (!%p94_p1)
}
  0x20   :  { %28 = dma.hbm_to_vmem [thread:$0]  %s147_s1, 128, %s26_s12, [#allocation5]  }
  0x21   :  { %98 = dma.done.wait [#allocation3], 128  }
  0x22   :  { %99 = vsyncadd [#allocation3], 4294967168 }
  0x23   :  { %100 = dma.done.wait [#allocation5], 128  }
  0x24   :  { %101 = vsyncadd [#allocation5], 4294967168  ;;  %v35_v0 = vld [vmem:[#allocation4] sm:$0xff]  ;;  %v36_v1 = vld [vmem:[#allocation2] sm:$0xff]  ;;  %vm40_vm0 = vcmask 261120   ;;  %vm44_vm1 = vcmask 7168  }
  0x25   :  { %v37_v2 = vsub.f32 %v35_v0, %v36_v1 }
  0x27   :  { %v38_v3 = vmax.f32 %v37_v2, 0.0 }
  0x29   :  { %v39_v4 = vmul.f32 %v38_v3, %v38_v3 }
  0x2b   :  { %v41_v5 = vsel %vm40_vm0, %v39_v4, 0.0 }
  0x2c   :  { %42 = vadd.xlane.f32.xlu0 %v41_v5 }
  0xb9   :  { %v43_v6 = vpop.xlane.xlu0 %42 }
  0xba   :  { %45 = vst.msk [vmem:[%s148_s2] sm:$0xff] %vm44_vm1, %v43_v6 }
  0xbb   :  { %50 = vsyncpa [#allocation3], 1 }
  0xbc   :  { %51 = vsyncpa [#allocation5], 1 }

</bundles_post_ra>
